<compile_context>
chip_gen: v7x
topology: tpu7x:2x2x1
jax: 0.10.0
libtpu: 0.0.40
codegen_flags: <defaults>
</compile_context>

<pallas_src>
import functools

import jax
import jax.numpy as jnp
from jax.experimental import pallas as pl
from jax.experimental.pallas import tpu as pltpu


def _round_up(x, m):
    return (x + m - 1) // m * m


# ----------------------------- Pallas kernel ------------------------------ #
def _ptr_critic_kernel(
    feat_ref,      # (Bb, I+S+P) f32 : [instruction | state | previous_action]
    actions_ref,   # (Bb, N, D)  f32
    lm_ref,        # (I+pad, E)  bf16: rows [0:I]=W_lm, row I = b_lm
    w_ref,         # (R, H)      bf16: [W_seq | W_emb | W_state;W_prev | b_h | v^T]
    proba_ref,     # out (Bb, N) f32
    *,
    I, D, E, SP, off_emb, off_sp, off_bh, off_v,
):
    f32 = jnp.float32
    bf16 = jnp.bfloat16

    feat = feat_ref[...]
    instr = feat[:, :I].astype(bf16)          # (Bb, I)
    sp = feat[:, I:I + SP].astype(bf16)       # (Bb, S+P)

    # --- language model: emb = tanh(instr @ W_lm + b_lm) --------------------
    w_lm = lm_ref[0:I, :]                     # (I, E) bf16
    b_lm = lm_ref[I:I + 1, :].astype(f32)     # (1, E)
    emb = jnp.tanh(jnp.dot(instr, w_lm, preferred_element_type=f32) + b_lm)

    # --- condition projection (== concat([emb, state, prev]) @ W_cond + b) --
    w_emb = w_ref[off_emb:off_emb + E, :]             # (E, H)
    w_sp = w_ref[off_sp:off_sp + SP, :]               # (S+P, H)
    b_h = w_ref[off_bh:off_bh + 1, :].astype(f32)     # (1, H)
    cond = (
        jnp.dot(emb.astype(bf16), w_emb, preferred_element_type=f32)
        + jnp.dot(sp, w_sp, preferred_element_type=f32)
        + b_h
    )                                                 # (Bb, H)

    # --- pointer attention over the action sequence -------------------------
    acts = actions_ref[...]                           # (Bb, N, D)
    Bb, N, _ = acts.shape
    w_seq = w_ref[0:D, :]                             # (D, H)
    # single fused 2-D matmul instead of a batched (Bx) dot_general
    seq_proj = jnp.dot(
        acts.reshape(Bb * N, D).astype(bf16), w_seq, preferred_element_type=f32
    )                                                 # (Bb*N, H)
    H = seq_proj.shape[-1]
    hidden = jnp.tanh(seq_proj.reshape(Bb, N, H) + cond[:, None, :])

    # u = hidden @ v   -> VPU multiply + XLU lane reduce (no (H,1) MXU push)
    v_row = w_ref[off_v:off_v + 1, :].astype(f32)     # (1, H)
    u = jnp.sum(hidden * v_row[None, :, :], axis=-1)  # (Bb, N)

    # --- softmax -> action_proba ---------------------------------------------
    m = jnp.max(u, axis=-1, keepdims=True)
    e = jnp.exp(u - m)
    proba_ref[...] = (e / jnp.sum(e, axis=-1, keepdims=True)).astype(
        proba_ref.dtype
    )


# ----------------------------- kernel wrapper ------------------------------ #
def _pointer_select(instruction, state, previous_action, actions, lm, sel):
    """Runs one InstructedPointerNetwork (with the shared language model)."""
    B, N, D = actions.shape
    I = instruction.shape[1]
    S = state.shape[1]
    P = previous_action.shape[1]
    SP = S + P
    E = lm["w_lm"].shape[1]
    H = sel["w_seq"].shape[1]

    # ---- host-side packing: 12 operands -> 4 (cuts tiny-DMA count) ---------
    feat = jnp.concatenate(
        [instruction, state, previous_action], axis=1
    ).astype(jnp.float32)                                        # (B, I+S+P)

    lm_slab = jnp.zeros((_round_up(I + 1, 8), E), jnp.float32)
    lm_slab = lm_slab.at[:I].set(lm["w_lm"]).at[I:I + 1].set(lm["b_lm"])
    lm_slab = lm_slab.astype(jnp.bfloat16)

    off_emb = D
    off_sp = D + E
    off_bh = D + E + SP
    off_v = _round_up(off_bh + 1, 8)
    rows = _round_up(off_v + 1, 8)
    w_slab = jnp.zeros((rows, H), jnp.float32)
    w_slab = (
        w_slab.at[0:D].set(sel["w_seq"])
        .at[off_emb:off_emb + E].set(sel["w_emb"])
        .at[off_sp:off_sp + S].set(sel["w_state"])
        .at[off_sp + S:off_sp + SP].set(sel["w_prev"])
        .at[off_bh:off_bh + 1].set(sel["b_h"])
        .at[off_v:off_v + 1].set(sel["v"].T)
    ).astype(jnp.bfloat16)

    # batch blocking: full batch at toy sizes; 128-row blocks at production
    # sizes so the "parallel" grid shards across v7x's two TensorCores.
    bb = B if B <= 128 else 128
    grid = (pl.cdiv(B, bb),)
    F = I + SP

    kernel = functools.partial(
        _ptr_critic_kernel,
        I=I, D=D, E=E, SP=SP,
        off_emb=off_emb, off_sp=off_sp, off_bh=off_bh, off_v=off_v,
    )

    cost = pl.CostEstimate(
        flops=2 * B * (I * E + E * H + SP * H + N * D * H + N * H),
        transcendentals=B * E + B * N * H + B * N,
        bytes_accessed=(
            feat.size * 4 + actions.size * 4 + B * N * 4
            + lm_slab.size * 2 + w_slab.size * 2
        ),
    )

    proba = pl.pallas_call(
        kernel,
        out_shape=jax.ShapeDtypeStruct((B, N), jnp.float32),
        grid=grid,
        in_specs=[
            pl.BlockSpec((bb, F), lambda b: (b, 0)),
            pl.BlockSpec((bb, N, D), lambda b: (b, 0, 0)),
            pl.BlockSpec(lm_slab.shape, lambda b: (0, 0)),
            pl.BlockSpec(w_slab.shape, lambda b: (0, 0)),
        ],
        out_specs=pl.BlockSpec((bb, N), lambda b: (b, 0)),
        compiler_params=pltpu.CompilerParams(
            dimension_semantics=("parallel",)
        ),
        cost_estimate=cost,
    )(feat, actions.astype(jnp.float32), lm_slab, w_slab)

    # argmax in the wrapper (XLA fuses it); softmax is monotone, so
    # argmax(proba) == argmax(u).  Removes a lane-width-1 int32 output DMA.
    best = jnp.argmax(proba, axis=-1).astype(jnp.int32)
    return proba, best


# ----------------------------- module wrapper ------------------------------ #
def different_ptr_net_critic_forward(
    instruction, state, previous_action, actions, step, params
):
    """Mirrors DifferentPtrNetCritic.forward (step dispatch is static)."""
    lm = params["language_model"]
    if step == "thing":
        sel = params["thing_selector"]
    elif step == "channel":
        sel = params["channel_selector"]
    elif step == "action":
        sel = params["action_selector"]
    elif step in ("params", "go"):
        # TODO(synk): reference module sets selector=None and returns nothing here.
        return None
    else:
        raise NotImplementedError(step)
    return _pointer_select(instruction, state, previous_action, actions, lm, sel)


# ------------------------- deterministic parameters ------------------------ #
def _make_params(I, E, S, P, D, H):
    key = jax.random.PRNGKey(42)

    def nrm(k, shape):
        return (0.1 * jax.random.normal(k, shape)).astype(jnp.float32)

    k_lm, k_rest = jax.random.split(key)
    k_lm_w, k_lm_b = jax.random.split(k_lm)
    lm = {"w_lm": nrm(k_lm_w, (I, E)), "b_lm": nrm(k_lm_b, (1, E))}

    selectors = {}
    for name, k_sel in zip(
        ("thing_selector", "channel_selector", "action_selector"),
        jax.random.split(k_rest, 3),
    ):
        ks = jax.random.split(k_sel, 6)
        selectors[name] = {
            "w_seq": nrm(ks[0], (D, H)),
            "w_emb": nrm(ks[1], (E, H)),
            "w_state": nrm(ks[2], (S, H)),
            "w_prev": nrm(ks[3], (P, H)),
            "b_h": nrm(ks[4], (1, H)),
            "v": nrm(ks[5], (H, 1)),
        }
    return {"language_model": lm, **selectors}


# ----------------------------------- main ---------------------------------- #
if __name__ == "__main__":
    # Small shapes consistent with the forward pass.
    B = 2     # batch
    I = 16    # instruction feature dim
    E = 32    # language-model embedding dim
    S = 16    # state dim
    P = 8     # previous-action dim
    N = 8     # number of candidate actions (pointer targets)
    D = 16    # per-action feature dim
    H = 32    # pointer-net hidden dim

    params = _make_params(I, E, S, P, D, H)

    key = jax.random.PRNGKey(0)
    k1, k2, k3, k4 = jax.random.split(key, 4)
    instruction = jax.random.normal(k1, (B, I), dtype=jnp.float32)
    state = jax.random.normal(k2, (B, S), dtype=jnp.float32)
    previous_action = jax.random.normal(k3, (B, P), dtype=jnp.float32)
    actions = jax.random.normal(k4, (B, N, D), dtype=jnp.float32)

    fwd = jax.jit(
        functools.partial(
            different_ptr_net_critic_forward, step="thing", params=params
        )
    )
    action_proba, best_action = fwd(instruction, state, previous_action, actions)
    jax.block_until_ready((action_proba, best_action))

    # sanity: shapes and probabilities sum to 1
    assert action_proba.shape == (B, N)
    assert best_action.shape == (B,)
    assert jnp.allclose(jnp.sum(action_proba, axis=-1), 1.0, atol=1e-5)
    assert jnp.all((best_action >= 0) & (best_action < N))

    print("KERNEL_OK")
</pallas_src>

<mosaic_0001>
module attributes {stable_mosaic.version = 11 : i64} {
  func.func @_ptr_critic_kernel(%arg0: i32, %arg1: memref<2x40xf32, #tpu.memory_space<vmem>>, %arg2: memref<2x8x16xf32, #tpu.memory_space<vmem>>, %arg3: memref<24x32xbf16, #tpu.memory_space<vmem>>, %arg4: memref<88x32xbf16, #tpu.memory_space<vmem>>, %arg5: memref<2x8xf32, #tpu.memory_space<vmem>>) attributes {dimension_semantics = [#tpu.dimension_semantics<parallel>], iteration_bounds = array<i64: 1>, scalar_prefetch = 0 : i64, scratch_operands = 0 : i64, tpu.core_type = #tpu.core_type<tc>, window_params = [{transform_indices = @transform_0, window_bounds = array<i64: 2, 40>}, {transform_indices = @transform_1, window_bounds = array<i64: 2, 8, 16>}, {pipeline_mode = #tpu.pipeline_mode<synchronous>, transform_indices = @transform_2, window_bounds = array<i64: 24, 32>}, {pipeline_mode = #tpu.pipeline_mode<synchronous>, transform_indices = @transform_3, window_bounds = array<i64: 88, 32>}, {transform_indices = @transform_4, window_bounds = array<i64: 2, 8>}]} {
    %c0 = arith.constant 0 : index
    %c0_0 = arith.constant 0 : index
    %0 = vector.load %arg1[%c0, %c0_0] : memref<2x40xf32, #tpu.memory_space<vmem>>, vector<2x40xf32>
    %1 = vector.extract_strided_slice %0 {offsets = [0, 0], sizes = [2, 16], strides = [1, 1]} : vector<2x40xf32> to vector<2x16xf32>
    %2 = arith.truncf %1 : vector<2x16xf32> to vector<2x16xbf16>
    %3 = vector.extract_strided_slice %0 {offsets = [0, 16], sizes = [2, 24], strides = [1, 1]} : vector<2x40xf32> to vector<2x24xf32>
    %4 = arith.truncf %3 : vector<2x24xf32> to vector<2x24xbf16>
    %c0_1 = arith.constant 0 : index
    %c0_2 = arith.constant 0 : index
    %5 = vector.load %arg3[%c0_1, %c0_2] : memref<24x32xbf16, #tpu.memory_space<vmem>>, vector<16x32xbf16>
    %c16 = arith.constant 16 : index
    %c0_3 = arith.constant 0 : index
    %6 = vector.load %arg3[%c16, %c0_3] : memref<24x32xbf16, #tpu.memory_space<vmem>>, vector<1x32xbf16>
    %7 = arith.extf %6 : vector<1x32xbf16> to vector<1x32xf32>
    %cst = arith.constant dense<0.000000e+00> : vector<2x32xf32>
    %8 = tpu.matmul %2, %5, %cst {dimension_numbers = #tpu.dot_dimension_numbers<[1], [0], [0], [1], [0, 0, 1, 1], [], []>} : vector<2x16xbf16>, vector<16x32xbf16>, vector<2x32xf32> -> vector<2x32xf32>
    %9 = vector.broadcast %7 : vector<1x32xf32> to vector<2x32xf32>
    %10 = arith.addf %8, %9 : vector<2x32xf32>
    %11 = math.tanh %10 : vector<2x32xf32>
    %c16_4 = arith.constant 16 : index
    %c0_5 = arith.constant 0 : index
    %12 = vector.load %arg4[%c16_4, %c0_5] : memref<88x32xbf16, #tpu.memory_space<vmem>>, vector<32x32xbf16>
    %c48 = arith.constant 48 : index
    %c0_6 = arith.constant 0 : index
    %13 = vector.load %arg4[%c48, %c0_6] : memref<88x32xbf16, #tpu.memory_space<vmem>>, vector<24x32xbf16>
    %c72 = arith.constant 72 : index
    %c0_7 = arith.constant 0 : index
    %14 = vector.load %arg4[%c72, %c0_7] : memref<88x32xbf16, #tpu.memory_space<vmem>>, vector<1x32xbf16>
    %15 = arith.extf %14 : vector<1x32xbf16> to vector<1x32xf32>
    %16 = arith.truncf %11 : vector<2x32xf32> to vector<2x32xbf16>
    %cst_8 = arith.constant dense<0.000000e+00> : vector<2x32xf32>
    %17 = tpu.matmul %16, %12, %cst_8 {dimension_numbers = #tpu.dot_dimension_numbers<[1], [0], [0], [1], [0, 0, 1, 1], [], []>} : vector<2x32xbf16>, vector<32x32xbf16>, vector<2x32xf32> -> vector<2x32xf32>
    %cst_9 = arith.constant dense<0.000000e+00> : vector<2x32xf32>
    %18 = tpu.matmul %4, %13, %cst_9 {dimension_numbers = #tpu.dot_dimension_numbers<[1], [0], [0], [1], [0, 0, 1, 1], [], []>} : vector<2x24xbf16>, vector<24x32xbf16>, vector<2x32xf32> -> vector<2x32xf32>
    %19 = arith.addf %17, %18 : vector<2x32xf32>
    %20 = vector.broadcast %15 : vector<1x32xf32> to vector<2x32xf32>
    %21 = arith.addf %19, %20 : vector<2x32xf32>
    %c0_10 = arith.constant 0 : index
    %c0_11 = arith.constant 0 : index
    %c0_12 = arith.constant 0 : index
    %22 = vector.load %arg2[%c0_10, %c0_11, %c0_12] : memref<2x8x16xf32, #tpu.memory_space<vmem>>, vector<2x8x16xf32>
    %c0_13 = arith.constant 0 : index
    %c0_14 = arith.constant 0 : index
    %23 = vector.load %arg4[%c0_13, %c0_14] : memref<88x32xbf16, #tpu.memory_space<vmem>>, vector<16x32xbf16>
    %24 = vector.shape_cast %22 : vector<2x8x16xf32> to vector<16x16xf32>
    %25 = arith.truncf %24 : vector<16x16xf32> to vector<16x16xbf16>
    %cst_15 = arith.constant dense<0.000000e+00> : vector<16x32xf32>
    %26 = tpu.matmul %25, %23, %cst_15 {dimension_numbers = #tpu.dot_dimension_numbers<[1], [0], [0], [1], [0, 0, 1, 1], [], []>} : vector<16x16xbf16>, vector<16x32xbf16>, vector<16x32xf32> -> vector<16x32xf32>
    %27 = vector.shape_cast %26 : vector<16x32xf32> to vector<2x8x32xf32>
    %28 = vector.shape_cast %21 : vector<2x32xf32> to vector<2x1x32xf32>
    %29 = vector.broadcast %28 : vector<2x1x32xf32> to vector<2x8x32xf32>
    %30 = arith.addf %27, %29 : vector<2x8x32xf32>
    %31 = math.tanh %30 : vector<2x8x32xf32>
    %c80 = arith.constant 80 : index
    %c0_16 = arith.constant 0 : index
    %32 = vector.load %arg4[%c80, %c0_16] : memref<88x32xbf16, #tpu.memory_space<vmem>>, vector<1x32xbf16>
    %33 = arith.extf %32 : vector<1x32xbf16> to vector<1x32xf32>
    %34 = vector.shape_cast %33 : vector<1x32xf32> to vector<1x1x32xf32>
    %35 = vector.broadcast %34 : vector<1x1x32xf32> to vector<2x8x32xf32>
    %36 = arith.mulf %31, %35 : vector<2x8x32xf32>
    %cst_17 = arith.constant dense<0.000000e+00> : vector<2x8xf32>
    %37 = vector.multi_reduction <add>, %36, %cst_17 [2] : vector<2x8x32xf32> to vector<2x8xf32>
    %cst_18 = arith.constant dense<0xFF800000> : vector<2xf32>
    %38 = vector.multi_reduction <maximumf>, %37, %cst_18 [1] : vector<2x8xf32> to vector<2xf32>
    %39 = vector.shape_cast %38 : vector<2xf32> to vector<2x1xf32>
    %40 = vector.broadcast %39 : vector<2x1xf32> to vector<2x8xf32>
    %41 = arith.subf %37, %40 : vector<2x8xf32>
    %42 = math.exp %41 : vector<2x8xf32>
    %cst_19 = arith.constant dense<0.000000e+00> : vector<2xf32>
    %43 = vector.multi_reduction <add>, %42, %cst_19 [1] : vector<2x8xf32> to vector<2xf32>
    %44 = vector.shape_cast %43 : vector<2xf32> to vector<2x1xf32>
    %45 = vector.broadcast %44 : vector<2x1xf32> to vector<2x8xf32>
    %46 = arith.divf %42, %45 : vector<2x8xf32>
    %c0_20 = arith.constant 0 : index
    %c0_21 = arith.constant 0 : index
    %47 = vector.load %arg5[%c0_20, %c0_21] : memref<2x8xf32, #tpu.memory_space<vmem>>, vector<2x8xf32>
    tpu.vector_store %arg5[%c0_20, %c0_21], %46 {strides = array<i32>} : memref<2x8xf32, #tpu.memory_space<vmem>>, vector<2x8xf32>,
    return
  }
  func.func @transform_0(%arg0: i32) -> (i32, i32) {
    %c0_i32 = arith.constant 0 : i32
    %c0_i32_0 = arith.constant 0 : i32
    return %arg0, %c0_i32 : i32, i32
  }
  func.func @transform_1(%arg0: i32) -> (i32, i32, i32) {
    %c0_i32 = arith.constant 0 : i32
    %c0_i32_0 = arith.constant 0 : i32
    %c0_i32_1 = arith.constant 0 : i32
    return %arg0, %c0_i32, %c0_i32_0 : i32, i32, i32
  }
  func.func @transform_2(%arg0: i32) -> (i32, i32) {
    %c0_i32 = arith.constant 0 : i32
    %c0_i32_0 = arith.constant 0 : i32
    %c0_i32_1 = arith.constant 0 : i32
    return %c0_i32, %c0_i32_0 : i32, i32
  }
  func.func @transform_3(%arg0: i32) -> (i32, i32) {
    %c0_i32 = arith.constant 0 : i32
    %c0_i32_0 = arith.constant 0 : i32
    %c0_i32_1 = arith.constant 0 : i32
    return %c0_i32, %c0_i32_0 : i32, i32
  }
  func.func @transform_4(%arg0: i32) -> (i32, i32) {
    %c0_i32 = arith.constant 0 : i32
    %c0_i32_0 = arith.constant 0 : i32
    return %arg0, %c0_i32 : i32, i32
  }
}

</mosaic_0001>

<bundles_post_ra>
// kernel: different_ptr_net_critic_forward.1
= control target key start
LH: loop header
LB: loop body
LE: loop exit
PB: predicated region body
PF: predicated region fallthrough
CT: control target
= control target key end

     0   :  { %9 = vsyncpa [#allocation3], 0  ;;  %s668_s0 = inlined_call_operand.vmem [shape: f32[2,40], index: 0, kind: input, shape index: {}]   ;;  %s669_s1 = inlined_call_operand.vmem [shape: f32[2,8,16], index: 1, kind: input, shape index: {}]   ;;  %s670_s2 = inlined_call_operand.hbm [shape: bf16[24,32], index: 2, kind: input, shape index: {}]   ;;  %s671_s3 = inlined_call_operand.hbm [shape: bf16[88,32], index: 3, kind: input, shape index: {}]   ;;  %s672_s4 = inlined_call_operand.vmem [shape: f32[2,8], index: 4, kind: output, shape index: {}]  }
   0x1   :  { %10 = vsyncpa [#allocation5], 0  ;;  %s568_s15 = smov [#allocation2]   ;;  %s520_s19 = scalar_lea.hbm %s670_s2, 192 }
   0x2   :  { %s20_s16 = sshll.u32 %s568_s15, 4  ;;  %p521_p0 = scmp.ne.s32.totalorder %s670_s2, %s520_s19  ;;  %s21_s16 = int_to_ptr.vmem [resolvable:$true] %s20_s16 }
   0x3   :  { %p524_p1 = scmp.lt.u32.totalorder %s520_s19, %s670_s2 }
   0x5   :  { %p526_p2 = pnand %p524_p1, %p521_p0 }
   0x7   :  { %529 = shalt.err (!%p526_p2)
}
   0x8   :  { %s530_s24 = scalar_lea.vmem %s21_s16, 192  ;;  %p535_p4 = scmp.lt.s32.totalorder %s21_s16, %s21_s16 }
   0x9   :  { %p531_p3 = scmp.ne.s32.totalorder %s21_s16, %s530_s24  ;;  %p536_p5 = scmp.lt.s32.totalorder %s530_s24, %s530_s24 }
   0xb   :  { %p537_p6 = por %p536_p5, %p535_p4 }
   0xd   :  { %p538_p7 = pnand %p537_p6, %p531_p3 }
   0xf   :  { %541 = shalt.err (!%p538_p7)
}
  0x10   :  { %s569_s25 = smov 64   ;;  %s570_s26 = smov 4  }
  0x11   :  { %26 = dma.hbm_to_vmem [thread:$0]  %s670_s2, 192, %s21_s16, [#allocation3], %s569_s25, %s569_s25, %s570_s26  }
  0x12   :  { %s571_s29 = smov [#allocation4]   ;;  %s542_s7 = scalar_lea.hbm %s671_s3, 704 }
  0x13   :  { %s32_s30 = sshll.u32 %s571_s29, 4  ;;  %p543_p8 = scmp.ne.s32.totalorder %s671_s3, %s542_s7  ;;  %s33_s30 = int_to_ptr.vmem [resolvable:$true] %s32_s30 }
  0x14   :  { %p546_p9 = scmp.lt.u32.totalorder %s542_s7, %s671_s3 }
  0x16   :  { %p548_p10 = pnand %p546_p9, %p543_p8 }
  0x18   :  { %551 = shalt.err (!%p548_p10)
}
  0x19   :  { %s552_s12 = scalar_lea.vmem %s33_s30, 704  ;;  %p557_p12 = scmp.lt.s32.totalorder %s33_s30, %s33_s30 }
  0x1a   :  { %p553_p11 = scmp.ne.s32.totalorder %s33_s30, %s552_s12  ;;  %p558_p13 = scmp.lt.s32.totalorder %s552_s12, %s552_s12 }
  0x1c   :  { %p559_p0 = por %p558_p13, %p557_p12 }
  0x1e   :  { %p560_p1 = pnand %p559_p0, %p553_p11 }
  0x20   :  { %563 = shalt.err (!%p560_p1)
}
  0x21   :  { %38 = dma.hbm_to_vmem [thread:$0]  %s671_s3, 704, %s33_s30, [#allocation5], %s569_s25, %s569_s25, %s570_s26  }
  0x22   :  { %564 = dma.done.wait [#allocation3], 192  }
  0x23   :  { %565 = vsyncadd [#allocation3], 4294967104 }
  0x24   :  { %566 = dma.done.wait [#allocation5], 704  }
  0x25   :  { %567 = vsyncadd [#allocation5], 4294966592  ;;  %v572_v0 = vmov 0.0   ;;  %vm573_vm0 = vmmov 0   ;;  %v500_v1 = vld [vmem:[#allocation2] sm:$0xff]   ;;  %vm62_vm1 = vcmask 130048   ;;  %v52_v14 = vlaneseq }
  0x26   :  { %461 = vmatprep.subr.bf16.mxu0 %v572_v0  ;;  %463 = vmatprep.mubr.msk.bf16.mxu0 %vm573_vm0, %v572_v0  ;;  %v46_v2 = vld [vmem:[%s668_s0] sm:$0x3]  ;;  %s574_s3 = smov 112   ;;  %v501_v4 = vld [vmem:[#allocation4 + $0x18] sm:$0xff]   ;;  %v502_v5 = vld [vmem:[#allocation4 + $0x8] sm:$0xff]   ;;  %vm133_vm2 = vcmask 1043456  }
  0x27   :  { %467 = vmatprep.subr.bf16.mxu1 %v572_v0  ;;  %471 = vmatprep.mubr.msk.bf16.mxu1 %vm573_vm0, %v572_v0  ;;  %v47_v3 = vpack.c.bf16 %v46_v2, %v46_v2  ;;  %v503_v6 = vld [vmem:[#allocation4 + $0x20] ss:$0 sps:$4 sm:$0xff]   ;;  %v504_v8 = vld [vmem:[#allocation4 + $0x10] sm:$0xff]   ;;  %vm129_vm3 = vcmask 195584   ;;  %v641_v15 = vshrl.u32 %v52_v14, 7  ;;  %vm189_vm4 = vcmask 261120  }
  0x28   :  { %462 = vmatpush3.bf16.msra.mxu0 %v500_v1  ;;  %468 = vmatpush3.bf16.msra.mxu1 %v501_v4  ;;  %v135_v7 = vsel %vm133_vm2, %v503_v6, 0  ;;  %v505_v9 = vld [vmem:[#allocation4] sm:$0xff]   ;;  %v238_v11 = vld [vmem:[%s669_s1] sm:$0xff]  ;;  %v50_v16 = vld [vmem:[#allocation2 + $0x8] sm:$0x1]  ;;  %v347_v1 = vand.u32 127, %v52_v14 }
  0x29   :  { %475 = vmatprep.subr.bf16.mxu0 %v572_v0  ;;  %118 = vrot.lane.b32.xlu0 %v47_v3, %s574_s3  ;;  %v239_v12 = vld [vmem:[%s669_s1 + $0x8] sm:$0xff]  ;;  %v51_v17 = vunpack.c.l.bf16 %v50_v16  ;;  %v644_v18 = vsub.s32 0, %v641_v15  ;;  %v114_v35 = vld [vmem:[#allocation4 + $0x24] sm:$0x1]  ;;  %v575_v36 = vmov 1966171168  }
  0x2a   :  { %469 = vmatprep.subr.bf16.mxu1 %v572_v0  ;;  %v242_v13 = vpack.c.bf16 %v239_v12, %v238_v11  ;;  %v295_v37 = vunpack.c.l.s4 %v575_v36  ;;  %v115_v38 = vunpack.c.l.bf16 %v114_v35  ;;  %v330_v56 = vld [vmem:[#allocation4 + $0x28] sm:$0x1]  ;;  %v350_v2 = vsub.s32 %v347_v1, %v641_v15 }
  0x2b   :  { %464 = vmatmul.mubr.msk.bf16.vlgmr.msra.gmra.mrb[0].mxu0 %vm62_vm1, %v47_v3  ;;  %v55_v19 = vrot.slane %v51_v17, %v644_v18  ;;  %v331_v57 = vunpack.c.l.bf16 %v330_v56  ;;  %vm356_vm5 = vcmask 1041409   ;;  %vm359_vm6 = vcmask 58368  }
  0x2c   :  { %479 = vmatprep.mubr.msk.bf16.mxu0 %vm573_vm0, %v572_v0  ;;  %476 = vmatpush3.bf16.msra.mxu0 %v502_v5  ;;  %v296_v39 = vunpack.c.0.s8 %v295_v37  ;;  %v236_v40 = vrot.slane %v115_v38, %v644_v18 }
  0x2d   :  { %470 = vmatpush3.bf16.msra.mxu1 %v135_v7  ;;  %477 = vmatprep.subr.bf16.mxu0 %v572_v0  ;;  %v335_v58 = vrot.slane %v331_v57, %v644_v18 }
  0x2e   :  { %483 = vmatprep.subr.bf16.mxu1 %v572_v0  ;;  %v299_v43 = vsub.s32 %v296_v39, %v641_v15 }
  0x30   :  { %478 = vmatpush3.bf16.msra.mxu0 %v504_v8 }
  0x9b   :  { %v119_v10 = vpop.permute.xlu0 %118 }
  0x9c   :  { %472 = vmatmul.mubr.msk.bf16.vlgmr.msra.gmra.mrb[0].mxu1 %vm129_vm3, %v119_v10  ;;  %v370_v10 = vsub.s32 1, %v641_v15 }
  0x9d   :  { %484 = vmatpush3.bf16.msra.mxu1 %v505_v9  ;;  %485 = vmatprep.mubr.msk.bf16.mxu1 %vm573_vm0, %v572_v0  ;;  %v576_v9 = vmov 0  }
  0x9e   :  { %498 = vset.pattern.permute.xlu1 %v576_v9  ;;  %499 = vset.pattern.permute.xlu0 %v576_v9 }
  0xa4   :  { %486 = vmatmul.mubr.msk.bf16.vlgmr.msra.gmra.mrb[4].mxu1 %vm62_vm1, %v242_v13 }
  0xfe   :  { %v100_v20 = vpop.f32.mrb[0].mxu0 }
  0xff   :  { %v101_v21 = vadd.f32 %v100_v20, %v55_v19  ;;  %v465_v22 = vpop.f32.mrb[1].mxu0 }
 0x100   :  { %v103_v23 = vpop.f32.mrb[2].mxu0 }
 0x101   :  { %506 = vtanh.f32 %v101_v21  ;;  %v466_v24 = vpop.f32.mrb[3].mxu0 }
 0x10b   :  { %v507_v25 = vpop.eup %506 }
 0x10c   :  { %v116_v26 = vpack.c.bf16 %v507_v25, %v507_v25 }
 0x10e   :  { %480 = vmatmul.mubr.msk.bf16.vlgmr.msra.gmra.mrb[4].mxu0 %vm189_vm4, %v116_v26 }
 0x16f   :  { %v171_v27 = vpop.f32.mrb[0].mxu1 }
 0x170   :  { %v473_v28 = vpop.f32.mrb[1].mxu1 }
 0x171   :  { %v174_v29 = vpop.f32.mrb[2].mxu1 }
 0x172   :  { %v474_v30 = vpop.f32.mrb[3].mxu1 }
 0x177   :  { %v286_v31 = vpop.f32.mrb[4].mxu1 }
 0x178   :  { %v487_v32 = vpop.f32.mrb[5].mxu1 }
 0x179   :  { %v289_v33 = vpop.f32.mrb[6].mxu1 }
 0x17a   :  { %v488_v34 = vpop.f32.mrb[7].mxu1 }
 0x1e1   :  { %v227_v41 = vpop.f32.mrb[4].mxu0 }
 0x1e2   :  { %v228_v42 = vadd.f32 %v227_v41, %v171_v27  ;;  %v481_v44 = vpop.f32.mrb[5].mxu0 }
 0x1e3   :  { %v230_v45 = vpop.f32.mrb[6].mxu0 }
 0x1e4   :  { %v237_v46 = vadd.f32 %v236_v40, %v228_v42  ;;  %v482_v47 = vpop.f32.mrb[7].mxu0 }
 0x1e6   :  { %v300_v48 = vrot.slane %v237_v46, %v299_v43 }
 0x1e8   :  { %v308_v49 = vrot.slane %v300_v48, %v299_v43  ;;  %v301_v50 = vcombine.high %v300_v48, %v300_v48 }
 0x1ea   :  { %v319_v51 = vrot.slane %v308_v49, %v644_v18  ;;  %v315_v52 = vrot.slane %v301_v50, %v299_v43 }
 0x1ec   :  { %v326_v53 = vadd.f32 %v319_v51, %v286_v31  ;;  %v323_v54 = vrot.slane %v315_v52, %v644_v18 }
 0x1ee   :  { %508 = vtanh.f32 %v326_v53  ;;  %v327_v55 = vadd.f32 %v323_v54, %v289_v33 }
 0x1f0   :  { %510 = vtanh.f32 %v327_v55 }
 0x1f8   :  { %v509_v59 = vpop.eup %508 }
 0x1f9   :  { %v336_v60 = vmul.f32 %v509_v59, %v335_v58 }
 0x1fa   :  { %v511_v61 = vpop.eup %510 }
 0x1fb   :  { %v338_v62 = vsel %vm189_vm4, %v336_v60, 0.0  ;;  %v337_v63 = vmul.f32 %v511_v61, %v335_v58 }
 0x1fc   :  { %339 = vadd.xlane.f32.xlu0 %v338_v62 }
 0x1fd   :  { %v341_v0 = vsel %vm189_vm4, %v337_v63, 0.0 }
 0x1fe   :  { %342 = vadd.xlane.f32.xlu1 %v341_v0 }
 0x289   :  { %v340_v3 = vpop.xlane.xlu0 %339 }
 0x28a   :  { %v351_v5 = vrot.slane %v340_v3, %v350_v2 }
 0x28b   :  { %v343_v4 = vpop.xlane.xlu1 %342 }
 0x28c   :  { %v355_v6 = vrot.slane %v343_v4, %v350_v2 }
 0x28e   :  { %v357_v7 = vsel %vm356_vm5, %v355_v6, %v351_v5 }
 0x28f   :  { %v360_v8 = vsel %vm359_vm6, %v357_v7, -inf }
 0x290   :  { %361 = vmax.xlane.f32.xlu1 %v360_v8 }
 0x31d   :  { %v362_v11 = vpop.xlane.xlu1 %361 }
 0x31e   :  { %v367_v12 = vrot.slane %v362_v11, %v644_v18  ;;  %v371_v13 = vrot.slane %v362_v11, %v370_v10 }
 0x320   :  { %v374_v14 = vsub.f32 %v340_v3, %v367_v12  ;;  %v375_v16 = vsub.f32 %v343_v4, %v371_v13 }
 0x322   :  { %v376_v17 = vmul.f32 1.442695, %v374_v14  ;;  %v378_v19 = vmul.f32 1.442695, %v375_v16 }
 0x324   :  { %512 = vpow2.f32 %v376_v17 }
 0x325   :  { %514 = vpow2.f32 %v378_v19 }
 0x32e   :  { %v513_v20 = vpop.eup %512 }
 0x32f   :  { %383 = vperm.xlu1 %498, %v513_v20   ;;  %v515_v21 = vpop.eup %514 }
 0x333   :  { %386 = vperm.xlu1 %498, %v515_v21  }
 0x3ae   :  { %v384_v22 = vpop.permute.xlu1 %383 }
 0x3af   :  { %v391_v24 = vrot.slane %v384_v22, %v350_v2 }
 0x3b2   :  { %v387_v23 = vpop.permute.xlu1 %386 }
 0x3b3   :  { %v395_v25 = vrot.slane %v387_v23, %v350_v2 }
 0x3b5   :  { %v396_v15 = vsel %vm356_vm5, %v395_v25, %v391_v24 }
 0x3b6   :  { %v398_v26 = vsel %vm359_vm6, %v396_v15, 0.0 }
 0x3b7   :  { %399 = vadd.xlane.f32.xlu1 %v398_v26 }
 0x444   :  { %v400_v27 = vpop.xlane.xlu1 %399 }
 0x445   :  { %v405_v28 = vrot.slane %v400_v27, %v644_v18  ;;  %v409_v29 = vrot.slane %v400_v27, %v370_v10 }
 0x447   :  { %516 = vrcp.f32 %v405_v28 }
 0x448   :  { %518 = vrcp.f32 %v409_v29 }
 0x451   :  { %v517_v30 = vpop.eup %516 }
 0x452   :  { %v519_v31 = vpop.eup %518  ;;  %v413_v32 = vmul.f32 %v517_v30, %v513_v20 }
 0x453   :  { %v415_v33 = vmul.f32 %v519_v31, %v515_v21 }
 0x454   :  { %419 = vperm.xlu0 %499, %v413_v32  }
 0x455   :  { %422 = vperm.xlu1 %498, %v415_v33  }
 0x4d3   :  { %v420_v34 = vpop.permute.xlu0 %419 }
 0x4d4   :  { %v423_v35 = vpop.permute.xlu1 %422  ;;  %v427_v36 = vrot.slane %v420_v34, %v350_v2 }
 0x4d5   :  { %v431_v37 = vrot.slane %v423_v35, %v350_v2 }
 0x4d7   :  { %v432_v38 = vsel %vm356_vm5, %v431_v37, %v427_v36 }
 0x4d8   :  { %434 = vst.msk [vmem:[%s672_s4] sm:$0x3] %vm359_vm6, %v432_v38 }
 0x4d9   :  { %439 = vsyncpa [#allocation3], 1 }
 0x4da   :  { %440 = vsyncpa [#allocation5], 1 }

</bundles_post_ra>
